<compile_context>
chip_gen: v7x
topology: tpu7x:2x2x1
jax: 0.10.0
libtpu: 0.0.40
codegen_flags: <defaults>
</compile_context>

<pallas_src>
import functools

import jax
import jax.numpy as jnp
from jax import lax
from jax.experimental import pallas as pl
from jax.experimental.pallas import tpu as pltpu


# --------------------------------------------------------------------------- #
# Kernel: B samples per grid step, everything lane-dense on W*C lanes.         #
# --------------------------------------------------------------------------- #
def _resblock_kernel(x_ref, w1_ref, w2_ref, bn1b_ref, bn2b_ref,
                     aw1_ref, ab1_ref, aw2_ref, ab2_ref, o_ref, *, H):
    M, WC = x_ref.shape                     # M = B*H rows, WC = W*C lanes
    cdt = w1_ref.dtype                      # MXU input dtype for the 3x3 convs

    # Per-sample H-border masks: the tile stacks B samples of H rows each, so a
    # row shifted from h-1 / h+1 must be zeroed at every sample's top / bottom
    # (this also covers the tile edges).
    rows = lax.broadcasted_iota(jnp.int32, (M, WC), 0) % H
    up_keep = rows != 0
    dn_keep = rows != (H - 1)

    def halo3(t):
        # rows (h-1, h, h+1) with per-sample zero borders, concatenated along
        # the tile-aligned lane axis -> (M, 3*WC), cast once for the MXU.
        zrow = jnp.zeros((1, WC), t.dtype)
        up = jnp.where(up_keep, jnp.concatenate([zrow, t[:M - 1, :]], axis=0), 0.0)
        dn = jnp.where(dn_keep, jnp.concatenate([t[1:, :], zrow], axis=0), 0.0)
        return jnp.concatenate([up, t, dn], axis=1).astype(cdt)

    x = x_ref[...]                                            # (M, WC) f32

    # conv1 (+ folded BN1 scale) as ONE (M, 3*WC) x (3*WC, WC) MXU contraction
    # against the banded weight matrix; BN1 bias + ReLU; Dropout2d(0.1) is
    # identity in eval mode.
    h1 = jnp.dot(halo3(x), w1_ref[...], preferred_element_type=jnp.float32)
    h1 = jnp.maximum(h1 + bn1b_ref[...], 0.0)

    # conv2 (+ folded BN2 scale) + BN2 bias
    out2 = jnp.dot(halo3(h1), w2_ref[...], preferred_element_type=jnp.float32)
    out2 = out2 + bn2b_ref[...]

    # channel attention (1x1 -> ReLU -> 1x1 -> sigmoid), lane-dense
    # block-diagonal matmuls; bottleneck is zero-padded to 128 lanes.
    a = jnp.maximum(
        jnp.dot(out2, aw1_ref[...], preferred_element_type=jnp.float32)
        + ab1_ref[...], 0.0)
    z = jnp.dot(a, aw2_ref[...], preferred_element_type=jnp.float32) + ab2_ref[...]
    att = 1.0 / (1.0 + jnp.exp(-z))                           # exact sigmoid

    # attention scale + residual add + ReLU; 128-lane-dense store.
    o_ref[...] = jnp.maximum(out2 * att + x, 0.0).astype(o_ref.dtype)


# --------------------------------------------------------------------------- #
# Wrapper-side weight restructuring                                            #
# --------------------------------------------------------------------------- #
def _fold_bn(gamma, beta, mean, var, eps=1e-5):
    scale = gamma / jnp.sqrt(var + eps)
    bias = beta - mean * scale
    return scale.astype(jnp.float32), bias.astype(jnp.float32)


def _band_conv_weight(w_oihw, W):
    """(Cout, Cin, 3, 3) -> (3*W*Cin, W*Cout) banded matrix.

    Row index = dh*(W*Cin) + w_in*Cin + ci, col index = w_out*Cout + co.
    Out-of-range W taps are simply absent (implicit zero padding along W).
    """
    Cout, Cin, KH, KW = w_oihw.shape
    blocks = []
    for dh in range(KH):
        m = jnp.zeros((W, Cin, W, Cout), jnp.float32)
        for dw in range(KW):
            shift = jnp.eye(W, k=1 - dw, dtype=jnp.float32)   # [w_in, w_out]
            m = m + jnp.einsum('xw,oi->xiwo', shift,
                               w_oihw[:, :, dh, dw].astype(jnp.float32))
        blocks.append(m.reshape(W * Cin, W * Cout))
    return jnp.concatenate(blocks, axis=0)


def _block_diag_1x1(w_oi, W):
    """1x1-conv weight (Cout, Cin) -> block-diagonal (W*Cin, W*Cout)."""
    Cout, Cin = w_oi.shape
    eye = jnp.eye(W, dtype=jnp.float32)
    return jnp.einsum('xw,oi->xiwo', eye,
                      w_oi.astype(jnp.float32)).reshape(W * Cin, W * Cout)


def _const_spec(arr):
    nd = arr.ndim
    return pl.BlockSpec(arr.shape, lambda *_: (0,) * nd)


def _pick_samples_per_step(N, H, target_rows=256):
    """Samples per grid step: aim for ~256 MXU rows, keep >=2 steps for v7x."""
    b = max(1, target_rows // max(H, 1))
    if N >= 2:
        b = min(b, (N + 1) // 2)        # grid length >= 2 -> both TCs get work
    return max(1, min(b, N))


def advanced_residual_block_nhwc(x_nhwc, params, *, conv_dtype=jnp.bfloat16,
                                 out_dtype=jnp.float32, samples_per_step=None,
                                 vmem_limit_bytes=32 * 1024 * 1024):
    """Eval-mode AdvancedResidualBlock(use_attention=True), NHWC in / NHWC out.

    conv_dtype: MXU input dtype for the two 3x3 contractions (f32 accumulation
    always); bf16 is valid and fastest on v5e/v6e/v7x.  out_dtype may be set to
    bf16 to halve HBM writeback if the consumer accepts it.
    """
    N, H, W, C = x_nhwc.shape
    WC = W * C
    assert WC % 128 == 0, "lane-dense packing requires W*C to be a multiple of 128"
    # TODO(synk): banded conv weight grows O((W*C)^2); for much larger W*C switch
    # to per-dh K=C accumulating matmuls instead of one banded contraction.

    scale1, bias1 = _fold_bn(*params['bn1'])
    scale2, bias2 = _fold_bn(*params['bn2'])

    # BN scale folded into the banded weight columns (column = (w_out, c_out)).
    w1b = (_band_conv_weight(params['conv1_w'], W)
           * jnp.tile(scale1, W)[None, :]).astype(conv_dtype)         # (3*WC, WC)
    w2b = (_band_conv_weight(params['conv2_w'], W)
           * jnp.tile(scale2, W)[None, :]).astype(conv_dtype)         # (3*WC, WC)
    bn1b = jnp.tile(bias1, W).reshape(1, WC).astype(jnp.float32)
    bn2b = jnp.tile(bias2, W).reshape(1, WC).astype(jnp.float32)

    Cr = params['att_w1'].shape[0]
    WCr = W * Cr
    alanes = max(128, pl.cdiv(WCr, 128) * 128)     # lane-pad attention bottleneck
    aw1 = _block_diag_1x1(params['att_w1'].reshape(Cr, C), W)         # (WC, WCr)
    aw2 = _block_diag_1x1(params['att_w2'].reshape(C, Cr), W)         # (WCr, WC)
    aw1p = jnp.zeros((WC, alanes), jnp.float32).at[:, :WCr].set(aw1)
    aw2p = jnp.zeros((alanes, WC), jnp.float32).at[:WCr, :].set(aw2)
    ab1p = jnp.zeros((1, alanes), jnp.float32).at[:, :WCr].set(
        jnp.tile(params['att_b1'].astype(jnp.float32), W))
    ab2 = jnp.tile(params['att_b2'], W).reshape(1, WC).astype(jnp.float32)

    # Batch B samples into each grid step (pad N up with zero samples if needed).
    B = samples_per_step or _pick_samples_per_step(N, H)
    G = pl.cdiv(N, B)
    pad = G * B - N
    xl = x_nhwc.astype(jnp.float32).reshape(N, H, WC)   # lane-dense (w, c) packing
    if pad:
        xl = jnp.concatenate([xl, jnp.zeros((pad, H, WC), jnp.float32)], axis=0)
    M = B * H
    xg = xl.reshape(G, M, WC)

    out = pl.pallas_call(
        functools.partial(_resblock_kernel, H=H),
        out_shape=jax.ShapeDtypeStruct((G, M, WC), out_dtype),
        grid=(G,),
        in_specs=[
            pl.BlockSpec((None, M, WC), lambda g: (g, 0, 0)),         # x (B samples)
            _const_spec(w1b), _const_spec(w2b),
            _const_spec(bn1b), _const_spec(bn2b),
            _const_spec(aw1p), _const_spec(ab1p),
            _const_spec(aw2p), _const_spec(ab2),
        ],
        out_specs=pl.BlockSpec((None, M, WC), lambda g: (g, 0, 0)),
        compiler_params=pltpu.CompilerParams(
            dimension_semantics=("parallel",),     # shard batch groups across TCs
            vmem_limit_bytes=vmem_limit_bytes),
    )(xg, w1b, w2b, bn1b, bn2b, aw1p, ab1p, aw2p, ab2)

    return out.reshape(G * B, H, W, C)[:N]


def advanced_residual_block(x_nchw, params, **kw):
    """NCHW parity wrapper for the PyTorch module.

    Prefer advanced_residual_block_nhwc (packed layout) inside a real network:
    each NCHW<->NHWC transpose is an extra full HBM read+write pass.
    """
    x = jnp.transpose(x_nchw, (0, 2, 3, 1))
    out = advanced_residual_block_nhwc(x, params, **kw)
    return jnp.transpose(out, (0, 3, 1, 2))


# --------------------------------------------------------------------------- #
# Pure-JAX reference (eval-mode semantics), NCHW in / NCHW out.                #
# --------------------------------------------------------------------------- #
def reference(x_nchw, params):
    x = jnp.transpose(x_nchw, (0, 2, 3, 1))
    C = x.shape[-1]
    eps = 1e-5

    def conv(h, w_oihw):
        w = jnp.transpose(w_oihw, (2, 3, 1, 0))       # HWIO
        return lax.conv_general_dilated(h, w, (1, 1), 'SAME',
                                        dimension_numbers=('NHWC', 'HWIO', 'NHWC'))

    def bn(h, gamma, beta, mean, var):
        return (h - mean) / jnp.sqrt(var + eps) * gamma + beta

    out = jax.nn.relu(bn(conv(x, params['conv1_w']), *params['bn1']))
    out = bn(conv(out, params['conv2_w']), *params['bn2'])
    Cr = params['att_w1'].shape[0]
    a = jax.nn.relu(jnp.einsum('nhwc,oc->nhwo', out, params['att_w1'].reshape(Cr, C))
                    + params['att_b1'])
    att = jax.nn.sigmoid(jnp.einsum('nhwr,or->nhwo', a, params['att_w2'].reshape(C, Cr))
                         + params['att_b2'])
    out = out * att
    out = jax.nn.relu(out + x)
    return jnp.transpose(out, (0, 3, 1, 2))


if __name__ == "__main__":
    N, C, H, W = 2, 8, 16, 16          # W * C == 128 -> fully lane-dense packing
    Cr = C // 4

    key = jax.random.PRNGKey(0)
    ks = jax.random.split(key, 16)

    params = {
        'conv1_w': 0.2 * jax.random.normal(ks[0], (C, C, 3, 3), jnp.float32),
        'conv2_w': 0.2 * jax.random.normal(ks[1], (C, C, 3, 3), jnp.float32),
        'bn1': (1.0 + 0.1 * jax.random.normal(ks[2], (C,), jnp.float32),
                0.1 * jax.random.normal(ks[3], (C,), jnp.float32),
                0.1 * jax.random.normal(ks[4], (C,), jnp.float32),
                0.5 + jnp.abs(jax.random.normal(ks[5], (C,), jnp.float32))),
        'bn2': (1.0 + 0.1 * jax.random.normal(ks[6], (C,), jnp.float32),
                0.1 * jax.random.normal(ks[7], (C,), jnp.float32),
                0.1 * jax.random.normal(ks[8], (C,), jnp.float32),
                0.5 + jnp.abs(jax.random.normal(ks[9], (C,), jnp.float32))),
        'att_w1': 0.2 * jax.random.normal(ks[10], (Cr, C, 1, 1), jnp.float32),
        'att_b1': 0.1 * jax.random.normal(ks[11], (Cr,), jnp.float32),
        'att_w2': 0.2 * jax.random.normal(ks[12], (C, Cr, 1, 1), jnp.float32),
        'att_b2': 0.1 * jax.random.normal(ks[13], (C,), jnp.float32),
    }

    x = jax.random.normal(ks[14], (N, C, H, W), jnp.float32)
    ref = jax.block_until_ready(reference(x, params))

    # Exact (f32 MXU) path: verifies the banded-conv / masking algebra tightly.
    out_f32 = jax.block_until_ready(
        advanced_residual_block(x, params, conv_dtype=jnp.float32))
    assert out_f32.shape == (N, C, H, W)
    assert bool(jnp.allclose(out_f32, ref, atol=1e-3, rtol=1e-3)), \
        "f32 kernel mismatch vs reference"

    # Default fast path: bf16 MXU inputs, f32 accumulation.
    out_bf16 = jax.block_until_ready(advanced_residual_block(x, params))
    assert out_bf16.shape == (N, C, H, W)
    assert bool(jnp.allclose(out_bf16, ref, atol=6e-2, rtol=4e-2)), \
        "bf16 kernel mismatch vs reference"

    print("KERNEL_OK")
</pallas_src>

<mosaic_0001>
module attributes {stable_mosaic.version = 11 : i64} {
  func.func @_resblock_kernel(%arg0: i32, %arg1: memref<1x16x128xf32, #tpu.memory_space<vmem>>, %arg2: memref<384x128xf32, #tpu.memory_space<vmem>>, %arg3: memref<384x128xf32, #tpu.memory_space<vmem>>, %arg4: memref<1x128xf32, #tpu.memory_space<vmem>>, %arg5: memref<1x128xf32, #tpu.memory_space<vmem>>, %arg6: memref<128x128xf32, #tpu.memory_space<vmem>>, %arg7: memref<1x128xf32, #tpu.memory_space<vmem>>, %arg8: memref<128x128xf32, #tpu.memory_space<vmem>>, %arg9: memref<1x128xf32, #tpu.memory_space<vmem>>, %arg10: memref<1x16x128xf32, #tpu.memory_space<vmem>>) attributes {dimension_semantics = [#tpu.dimension_semantics<parallel>], iteration_bounds = array<i64: 2>, scalar_prefetch = 0 : i64, scratch_operands = 0 : i64, tpu.core_type = #tpu.core_type<tc>, window_params = [{transform_indices = @transform_0, window_bounds = array<i64: 1, 16, 128>}, {pipeline_mode = #tpu.pipeline_mode<synchronous>, transform_indices = @transform_1, window_bounds = array<i64: 384, 128>}, {pipeline_mode = #tpu.pipeline_mode<synchronous>, transform_indices = @transform_2, window_bounds = array<i64: 384, 128>}, {pipeline_mode = #tpu.pipeline_mode<synchronous>, transform_indices = @transform_3, window_bounds = array<i64: 1, 128>}, {pipeline_mode = #tpu.pipeline_mode<synchronous>, transform_indices = @transform_4, window_bounds = array<i64: 1, 128>}, {pipeline_mode = #tpu.pipeline_mode<synchronous>, transform_indices = @transform_5, window_bounds = array<i64: 128, 128>}, {pipeline_mode = #tpu.pipeline_mode<synchronous>, transform_indices = @transform_6, window_bounds = array<i64: 1, 128>}, {pipeline_mode = #tpu.pipeline_mode<synchronous>, transform_indices = @transform_7, window_bounds = array<i64: 128, 128>}, {pipeline_mode = #tpu.pipeline_mode<synchronous>, transform_indices = @transform_8, window_bounds = array<i64: 1, 128>}, {transform_indices = @transform_9, window_bounds = array<i64: 1, 16, 128>}]} {
    %0 = tpu.iota {dimensions = array<i32: 0>} : vector<16x128xi32>
    %c16_i32 = arith.constant 16 : i32
    %c0_i32 = arith.constant 0 : i32
    %1 = arith.cmpi eq, %c16_i32, %c0_i32 : i32
    %c1_i32 = arith.constant 1 : i32
    %2 = arith.select %1, %c1_i32, %c16_i32 : i32
    %3 = vector.broadcast %2 : i32 to vector<16x128xi32>
    %4 = arith.remsi %0, %3 : vector<16x128xi32>
    %c0_i32_0 = arith.constant 0 : i32
    %5 = vector.broadcast %c0_i32_0 : i32 to vector<16x128xi32>
    %6 = arith.cmpi ne, %4, %5 : vector<16x128xi32>
    %c0_i32_1 = arith.constant 0 : i32
    %7 = vector.broadcast %c0_i32_1 : i32 to vector<16x128xi32>
    %8 = arith.cmpi slt, %4, %7 : vector<16x128xi32>
    %c0_i32_2 = arith.constant 0 : i32
    %9 = arith.cmpi slt, %2, %c0_i32_2 : i32
    %10 = vector.broadcast %9 : i1 to vector<16x128xi1>
    %11 = vector.broadcast %10 : vector<16x128xi1> to vector<16x128xi1>
    %12 = arith.xori %8, %11 : vector<16x128xi1>
    %13 = arith.andi %12, %6 : vector<16x128xi1>
    %14 = vector.broadcast %2 : i32 to vector<16x128xi32>
    %15 = arith.addi %4, %14 : vector<16x128xi32>
    %16 = arith.select %13, %15, %4 : vector<16x128xi1>, vector<16x128xi32>
    %c0_i32_3 = arith.constant 0 : i32
    %17 = vector.broadcast %c0_i32_3 : i32 to vector<16x128xi32>
    %18 = arith.cmpi ne, %16, %17 : vector<16x128xi32>
    %c15_i32 = arith.constant 15 : i32
    %19 = vector.broadcast %c15_i32 : i32 to vector<16x128xi32>
    %20 = arith.cmpi ne, %16, %19 : vector<16x128xi32>
    %c0 = arith.constant 0 : index
    %c0_4 = arith.constant 0 : index
    %c0_5 = arith.constant 0 : index
    %21 = vector.load %arg1[%c0, %c0_4, %c0_5] : memref<1x16x128xf32, #tpu.memory_space<vmem>>, vector<1x16x128xf32>
    %22 = vector.shape_cast %21 : vector<1x16x128xf32> to vector<16x128xf32>
    %cst = arith.constant 0.000000e+00 : f32
    %23 = vector.broadcast %cst : f32 to vector<1x128xf32>
    %24 = vector.extract_strided_slice %22 {offsets = [0, 0], sizes = [15, 128], strides = [1, 1]} : vector<16x128xf32> to vector<15x128xf32>
    %25 = tpu.concatenate %23, %24 in 0 : vector<1x128xf32>, vector<15x128xf32> -> vector<16x128xf32>
    %cst_6 = arith.constant 0.000000e+00 : f32
    %26 = vector.broadcast %cst_6 : f32 to vector<16x128xf32>
    %27 = arith.select %18, %25, %26 : vector<16x128xi1>, vector<16x128xf32>
    %28 = vector.extract_strided_slice %22 {offsets = [1, 0], sizes = [15, 128], strides = [1, 1]} : vector<16x128xf32> to vector<15x128xf32>
    %29 = tpu.concatenate %28, %23 in 0 : vector<15x128xf32>, vector<1x128xf32> -> vector<16x128xf32>
    %cst_7 = arith.constant 0.000000e+00 : f32
    %30 = vector.broadcast %cst_7 : f32 to vector<16x128xf32>
    %31 = arith.select %20, %29, %30 : vector<16x128xi1>, vector<16x128xf32>
    %32 = tpu.concatenate %27, %22, %31 in 1 : vector<16x128xf32>, vector<16x128xf32>, vector<16x128xf32> -> vector<16x384xf32>
    %c0_8 = arith.constant 0 : index
    %c0_9 = arith.constant 0 : index
    %33 = vector.load %arg2[%c0_8, %c0_9] : memref<384x128xf32, #tpu.memory_space<vmem>>, vector<384x128xf32>
    %cst_10 = arith.constant dense<0.000000e+00> : vector<16x128xf32>
    %34 = tpu.matmul %32, %33, %cst_10 {dimension_numbers = #tpu.dot_dimension_numbers<[1], [0], [0], [1], [0, 0, 1, 1], [], []>} : vector<16x384xf32>, vector<384x128xf32>, vector<16x128xf32> -> vector<16x128xf32>
    %c0_11 = arith.constant 0 : index
    %c0_12 = arith.constant 0 : index
    %35 = vector.load %arg4[%c0_11, %c0_12] : memref<1x128xf32, #tpu.memory_space<vmem>>, vector<1x128xf32>
    %36 = vector.broadcast %35 : vector<1x128xf32> to vector<16x128xf32>
    %37 = arith.addf %34, %36 : vector<16x128xf32>
    %cst_13 = arith.constant 0.000000e+00 : f32
    %38 = vector.broadcast %cst_13 : f32 to vector<16x128xf32>
    %39 = arith.maximumf %37, %38 : vector<16x128xf32>
    %cst_14 = arith.constant 0.000000e+00 : f32
    %40 = vector.broadcast %cst_14 : f32 to vector<1x128xf32>
    %41 = vector.extract_strided_slice %39 {offsets = [0, 0], sizes = [15, 128], strides = [1, 1]} : vector<16x128xf32> to vector<15x128xf32>
    %42 = tpu.concatenate %40, %41 in 0 : vector<1x128xf32>, vector<15x128xf32> -> vector<16x128xf32>
    %cst_15 = arith.constant 0.000000e+00 : f32
    %43 = vector.broadcast %cst_15 : f32 to vector<16x128xf32>
    %44 = arith.select %18, %42, %43 : vector<16x128xi1>, vector<16x128xf32>
    %45 = vector.extract_strided_slice %39 {offsets = [1, 0], sizes = [15, 128], strides = [1, 1]} : vector<16x128xf32> to vector<15x128xf32>
    %46 = tpu.concatenate %45, %40 in 0 : vector<15x128xf32>, vector<1x128xf32> -> vector<16x128xf32>
    %cst_16 = arith.constant 0.000000e+00 : f32
    %47 = vector.broadcast %cst_16 : f32 to vector<16x128xf32>
    %48 = arith.select %20, %46, %47 : vector<16x128xi1>, vector<16x128xf32>
    %49 = tpu.concatenate %44, %39, %48 in 1 : vector<16x128xf32>, vector<16x128xf32>, vector<16x128xf32> -> vector<16x384xf32>
    %c0_17 = arith.constant 0 : index
    %c0_18 = arith.constant 0 : index
    %50 = vector.load %arg3[%c0_17, %c0_18] : memref<384x128xf32, #tpu.memory_space<vmem>>, vector<384x128xf32>
    %cst_19 = arith.constant dense<0.000000e+00> : vector<16x128xf32>
    %51 = tpu.matmul %49, %50, %cst_19 {dimension_numbers = #tpu.dot_dimension_numbers<[1], [0], [0], [1], [0, 0, 1, 1], [], []>} : vector<16x384xf32>, vector<384x128xf32>, vector<16x128xf32> -> vector<16x128xf32>
    %c0_20 = arith.constant 0 : index
    %c0_21 = arith.constant 0 : index
    %52 = vector.load %arg5[%c0_20, %c0_21] : memref<1x128xf32, #tpu.memory_space<vmem>>, vector<1x128xf32>
    %53 = vector.broadcast %52 : vector<1x128xf32> to vector<16x128xf32>
    %54 = arith.addf %51, %53 : vector<16x128xf32>
    %c0_22 = arith.constant 0 : index
    %c0_23 = arith.constant 0 : index
    %55 = vector.load %arg6[%c0_22, %c0_23] : memref<128x128xf32, #tpu.memory_space<vmem>>, vector<128x128xf32>
    %cst_24 = arith.constant dense<0.000000e+00> : vector<16x128xf32>
    %56 = tpu.matmul %54, %55, %cst_24 {dimension_numbers = #tpu.dot_dimension_numbers<[1], [0], [0], [1], [0, 0, 1, 1], [], []>} : vector<16x128xf32>, vector<128x128xf32>, vector<16x128xf32> -> vector<16x128xf32>
    %c0_25 = arith.constant 0 : index
    %c0_26 = arith.constant 0 : index
    %57 = vector.load %arg7[%c0_25, %c0_26] : memref<1x128xf32, #tpu.memory_space<vmem>>, vector<1x128xf32>
    %58 = vector.broadcast %57 : vector<1x128xf32> to vector<16x128xf32>
    %59 = arith.addf %56, %58 : vector<16x128xf32>
    %cst_27 = arith.constant 0.000000e+00 : f32
    %60 = vector.broadcast %cst_27 : f32 to vector<16x128xf32>
    %61 = arith.maximumf %59, %60 : vector<16x128xf32>
    %c0_28 = arith.constant 0 : index
    %c0_29 = arith.constant 0 : index
    %62 = vector.load %arg8[%c0_28, %c0_29] : memref<128x128xf32, #tpu.memory_space<vmem>>, vector<128x128xf32>
    %cst_30 = arith.constant dense<0.000000e+00> : vector<16x128xf32>
    %63 = tpu.matmul %61, %62, %cst_30 {dimension_numbers = #tpu.dot_dimension_numbers<[1], [0], [0], [1], [0, 0, 1, 1], [], []>} : vector<16x128xf32>, vector<128x128xf32>, vector<16x128xf32> -> vector<16x128xf32>
    %c0_31 = arith.constant 0 : index
    %c0_32 = arith.constant 0 : index
    %64 = vector.load %arg9[%c0_31, %c0_32] : memref<1x128xf32, #tpu.memory_space<vmem>>, vector<1x128xf32>
    %65 = vector.broadcast %64 : vector<1x128xf32> to vector<16x128xf32>
    %66 = arith.addf %63, %65 : vector<16x128xf32>
    %cst_33 = arith.constant 0.000000e+00 : f32
    %67 = vector.broadcast %cst_33 : f32 to vector<16x128xf32>
    %68 = arith.subf %67, %66 : vector<16x128xf32>
    %69 = math.exp %68 : vector<16x128xf32>
    %cst_34 = arith.constant 1.000000e+00 : f32
    %70 = vector.broadcast %cst_34 : f32 to vector<16x128xf32>
    %71 = arith.addf %70, %69 : vector<16x128xf32>
    %cst_35 = arith.constant 1.000000e+00 : f32
    %72 = vector.broadcast %cst_35 : f32 to vector<16x128xf32>
    %73 = arith.divf %72, %71 : vector<16x128xf32>
    %74 = arith.mulf %54, %73 : vector<16x128xf32>
    %75 = arith.addf %74, %22 : vector<16x128xf32>
    %cst_36 = arith.constant 0.000000e+00 : f32
    %76 = vector.broadcast %cst_36 : f32 to vector<16x128xf32>
    %77 = arith.maximumf %75, %76 : vector<16x128xf32>
    %c0_37 = arith.constant 0 : index
    %c0_38 = arith.constant 0 : index
    %c0_39 = arith.constant 0 : index
    %78 = vector.load %arg10[%c0_37, %c0_38, %c0_39] : memref<1x16x128xf32, #tpu.memory_space<vmem>>, vector<1x16x128xf32>
    %79 = vector.shape_cast %78 : vector<1x16x128xf32> to vector<16x128xf32>
    %80 = vector.shape_cast %77 : vector<16x128xf32> to vector<1x16x128xf32>
    tpu.vector_store %arg10[%c0_37, %c0_38, %c0_39], %80 {strides = array<i32>} : memref<1x16x128xf32, #tpu.memory_space<vmem>>, vector<1x16x128xf32>,
    return
  }
  func.func @transform_0(%arg0: i32) -> (i32, i32, i32) {
    %c0_i32 = arith.constant 0 : i32
    %c0_i32_0 = arith.constant 0 : i32
    %c0_i32_1 = arith.constant 0 : i32
    return %arg0, %c0_i32, %c0_i32_0 : i32, i32, i32
  }
  func.func @transform_1(%arg0: i32) -> (i32, i32) {
    %c0_i32 = arith.constant 0 : i32
    %c0_i32_0 = arith.constant 0 : i32
    %c0_i32_1 = arith.constant 0 : i32
    return %c0_i32, %c0_i32_0 : i32, i32
  }
  func.func @transform_2(%arg0: i32) -> (i32, i32) {
    %c0_i32 = arith.constant 0 : i32
    %c0_i32_0 = arith.constant 0 : i32
    %c0_i32_1 = arith.constant 0 : i32
    return %c0_i32, %c0_i32_0 : i32, i32
  }
  func.func @transform_3(%arg0: i32) -> (i32, i32) {
    %c0_i32 = arith.constant 0 : i32
    %c0_i32_0 = arith.constant 0 : i32
    %c0_i32_1 = arith.constant 0 : i32
    return %c0_i32, %c0_i32_0 : i32, i32
  }
  func.func @transform_4(%arg0: i32) -> (i32, i32) {
    %c0_i32 = arith.constant 0 : i32
    %c0_i32_0 = arith.constant 0 : i32
    %c0_i32_1 = arith.constant 0 : i32
    return %c0_i32, %c0_i32_0 : i32, i32
  }
  func.func @transform_5(%arg0: i32) -> (i32, i32) {
    %c0_i32 = arith.constant 0 : i32
    %c0_i32_0 = arith.constant 0 : i32
    %c0_i32_1 = arith.constant 0 : i32
    return %c0_i32, %c0_i32_0 : i32, i32
  }
  func.func @transform_6(%arg0: i32) -> (i32, i32) {
    %c0_i32 = arith.constant 0 : i32
    %c0_i32_0 = arith.constant 0 : i32
    %c0_i32_1 = arith.constant 0 : i32
    return %c0_i32, %c0_i32_0 : i32, i32
  }
  func.func @transform_7(%arg0: i32) -> (i32, i32) {
    %c0_i32 = arith.constant 0 : i32
    %c0_i32_0 = arith.constant 0 : i32
    %c0_i32_1 = arith.constant 0 : i32
    return %c0_i32, %c0_i32_0 : i32, i32
  }
  func.func @transform_8(%arg0: i32) -> (i32, i32) {
    %c0_i32 = arith.constant 0 : i32
    %c0_i32_0 = arith.constant 0 : i32
    %c0_i32_1 = arith.constant 0 : i32
    return %c0_i32, %c0_i32_0 : i32, i32
  }
  func.func @transform_9(%arg0: i32) -> (i32, i32, i32) {
    %c0_i32 = arith.constant 0 : i32
    %c0_i32_0 = arith.constant 0 : i32
    %c0_i32_1 = arith.constant 0 : i32
    return %arg0, %c0_i32, %c0_i32_0 : i32, i32, i32
  }
}

</mosaic_0001>

<bundles_post_ra>
// kernel: tpu_custom_call.1
= control target key start
LH: loop header
LB: loop body
LE: loop exit
PB: predicated region body
PF: predicated region fallthrough
CT: control target
= control target key end

     0   :  { %s2472_s0 = inlined_call_operand.hbm [shape: f32[2,16,128], index: 0, kind: input, shape index: {}]   ;;  %s2473_s1 = inlined_call_operand.hbm [shape: f32[384,128], index: 1, kind: input, shape index: {}]   ;;  %s2474_s2 = inlined_call_operand.hbm [shape: f32[384,128], index: 2, kind: input, shape index: {}]   ;;  %s2475_s3 = inlined_call_operand.vmem [shape: f32[1,128], index: 3, kind: input, shape index: {}]   ;;  %s2476_s4 = inlined_call_operand.vmem [shape: f32[1,128], index: 4, kind: input, shape index: {}]   ;;  %s2477_s5 = inlined_call_operand.hbm [shape: f32[128,128], index: 5, kind: input, shape index: {}]   ;;  %s2478_s6 = inlined_call_operand.vmem [shape: f32[1,128], index: 6, kind: input, shape index: {}]   ;;  %s2479_s7 = inlined_call_operand.hbm [shape: f32[128,128], index: 7, kind: input, shape index: {}]   ;;  %s2480_s8 = inlined_call_operand.vmem [shape: f32[1,128], index: 8, kind: input, shape index: {}]   ;;  %s2481_s9 = inlined_call_operand.hbm [shape: f32[2,16,128], index: 9, kind: output, shape index: {}]  }
   0x1   :  { %2488 = sst [smem:[#allocation18_spill]] %s2481_s9 }
   0x2   :  { %14 = vsyncpa [#allocation3], 0 }
   0x3   :  { %16 = vsyncpa [#allocation3 + $0x1], 0 }
   0x4   :  { %17 = vsyncpa [#allocation6], 0 }
   0x5   :  { %18 = vsyncpa [#allocation9], 0 }
   0x6   :  { %19 = vsyncpa [#allocation4], 0 }
   0x7   :  { %21 = vsyncpa [#allocation4 + $0x1], 0  ;;  %s2124_s30 = smov 0   ;;  %s2126_s10 = smov 0  }
   0x8   :  { %s2128_s11 = smov 0   ;;  %s2130_s12 = smov 0  }
   0x9 LB: > { %2489 = sst [smem:[#allocation16_spill]] %s2050_s30  ;;  %s2145_s13 = sadd.s32 4294967295, %s2062_s12   ;;  %s2062_s12 = sphi %s2130_s12, %s2517_s12   ;;  %s2058_s11 = sphi %s2128_s11, %s2516_s11   ;;  %s2054_s10 = sphi %s2126_s10, %s2515_s10   ;;  %s2050_s30 = sphi %s2124_s30, %s2514_s30  }
   0xa   : > { %s1235_s14 = sadd.s32 4294967294, %s2062_s12   ;;  %p47_p0 = scmp.ne.s32.totalorder %s2054_s10, %s2050_s30 }
   0xb   : > { %p2482_p1 = scmp.eq.s32.totalorder %s2145_s13, 0  ;;  %p245_p3 = scmp.eq.s32.totalorder %s1235_s14, 1 }
   0xc   : > { %p1236_p5 = scmp.ge.s32.totalorder %s2062_s12, 1  ;;  %p252_p7 = scmp.lt.s32.totalorder %s2062_s12, 3 }
   0xd   : > { %p2154_p4 = por %p2482_p1, %p47_p0  ;;  %p2159_p6 = por %p245_p3, %p47_p0 }
   0xe   : > { %p2164_p8 = pnand %p1236_p5, %p252_p7  ;;  %s2064_s18 = smov [#allocation5]  }
   0xf   : > { %s2490_s15 = scalar_select %p2154_p4, 1, 0 }
  0x10   : > { %s2491_s16 = scalar_select %p2159_p6, 1, 0 }
  0x11   : > { %s2493_s17 = scalar_select %p2164_p8, 1, 0 }
  0x12   : > { %2492 = sst [smem:[#allocation17_spill]] %s2491_s16  ;;  %s264_s19 = sshll.u32 %s2064_s18, 4  ;;  %s2168_s19 = int_to_ptr.vmem [resolvable:$true] %s264_s19 }
  0x13   : > { %p1767_p9 = pneg %p2164_p8  ;;  %s2065_s21 = smov [#allocation8]  }
  0x14   : > { %s296_s22 = sshll.u32 %s2065_s21, 4  ;;  %s2066_s23 = smov [#allocation7]   ;;  %s2179_s22 = int_to_ptr.vmem [resolvable:$true] %s296_s22 }
  0x15   : > { %p2175_p11 = pnand %p1767_p9, %p2482_p1  ;;  %s2181_s24 = sshll.u32 %s2066_s23, 4  ;;  %s278_s24 = int_to_ptr.vmem [resolvable:$true] %s2181_s24 }
  0x16   : > { %s1846_s27 = scalar_lea.hbm %s2473_s1, 6144 }
  0x17   : > { %p1847_p12 = scmp.ne.s32.totalorder %s2473_s1, %s1846_s27  ;;  %p2191_p13 = pneg %p2175_p11 }
  0x18   : > { %p1853_p5 = scmp.lt.u32.totalorder %s1846_s27, %s2473_s1 }
  0x19   : > { %p1849_p0 = pnand %p2191_p13, %p1847_p12 }
  0x1b   : > { %p1850_p3 = pneg %p1849_p0 }
  0x1d   : > { %p1855_p7 = pnand %p1853_p5, %p1850_p3 }
  0x1f   : > { %1858 = shalt.err (!%p1855_p7)
}
  0x20   : > { %s1859_s23 = scalar_lea.vmem %s2168_s19, 6144  ;;  %p1867_p2 = scmp.lt.s32.totalorder %s2168_s19, %s2168_s19 }
  0x21   : > { %p1860_p9 = scmp.ne.s32.totalorder %s2168_s19, %s1859_s23  ;;  %p1868_p6 = scmp.lt.s32.totalorder %s1859_s23, %s1859_s23 }
  0x23   : > { %p1862_p10 = pnand %p1860_p9, %p2191_p13  ;;  %p1869_p12 = por %p1868_p6, %p1867_p2 }
  0x25   : > { %p1863_p1 = pneg %p1862_p10 }
  0x27   : > { %p1870_p0 = pnand %p1869_p12, %p1863_p1 }
  0x29   : > { %1873 = shalt.err (!%p1870_p0)
}
  0x2a   : > { %s2067_s25 = smov 128   ;;  %s2068_s26 = smov 8  }
  0x2b   : > { %1770 = dma.hbm_to_vmem [thread:$0]  (!%p2175_p11), %s2473_s1, 6144, %s2168_s19, [#allocation6], %s2067_s25, %s2067_s25, %s2068_s26  }
  0x2c   : > { %s1874_s21 = scalar_lea.hbm %s2477_s5, 2048 }
  0x2d   : > { %p1875_p1 = scmp.ne.s32.totalorder %s2477_s5, %s1874_s21  ;;  %p1881_p10 = scmp.lt.u32.totalorder %s1874_s21, %s2477_s5 }
  0x2f   : > { %p1877_p2 = pnand %p1875_p1, %p2191_p13 }
  0x31   : > { %p1878_p6 = pneg %p1877_p2 }
  0x33   : > { %p1883_p3 = pnand %p1881_p10, %p1878_p6 }
  0x35   : > { %1886 = shalt.err (!%p1883_p3)
}
  0x36   : > { %s1887_s19 = scalar_lea.vmem %s2179_s22, 2048  ;;  %p1895_p12 = scmp.lt.s32.totalorder %s2179_s22, %s2179_s22 }
  0x37   : > { %p1888_p5 = scmp.ne.s32.totalorder %s2179_s22, %s1887_s19  ;;  %p1896_p0 = scmp.lt.s32.totalorder %s1887_s19, %s1887_s19 }
  0x39   : > { %p1890_p7 = pnand %p1888_p5, %p2191_p13  ;;  %p1897_p1 = por %p1896_p0, %p1895_p12 }
  0x3b   : > { %p1891_p9 = pneg %p1890_p7 }
  0x3d   : > { %p1898_p2 = pnand %p1897_p1, %p1891_p9 }
  0x3f   : > { %1901 = shalt.err (!%p1898_p2)
}
  0x40   : > { %1776 = dma.hbm_to_vmem [thread:$0]  (!%p2175_p11), %s2477_s5, 2048, %s2179_s22, [#allocation9], %s2067_s25, %s2067_s25, %s2068_s26  }
  0x41   : > { %s1902_s28 = scalar_lea.hbm %s2474_s2, 6144 }
  0x42   : > { %p1903_p6 = scmp.ne.s32.totalorder %s2474_s2, %s1902_s28  ;;  %p1909_p5 = scmp.lt.u32.totalorder %s1902_s28, %s2474_s2 }
  0x44   : > { %p1905_p10 = pnand %p1903_p6, %p2191_p13 }
  0x46   : > { %p1906_p3 = pneg %p1905_p10 }
  0x48   : > { %p1911_p7 = pnand %p1909_p5, %p1906_p3 }
  0x4a   : > { %1914 = shalt.err (!%p1911_p7)
}
  0x4b   : > { %s1915_s19 = scalar_lea.vmem %s278_s24, 6144  ;;  %p1923_p1 = scmp.lt.s32.totalorder %s278_s24, %s278_s24 }
  0x4c   : > { %p1916_p9 = scmp.ne.s32.totalorder %s278_s24, %s1915_s19  ;;  %p1924_p2 = scmp.lt.s32.totalorder %s1915_s19, %s1915_s19 }
  0x4e   : > { %p1918_p12 = pnand %p1916_p9, %p2191_p13  ;;  %p1925_p4 = por %p1924_p2, %p1923_p1 }
  0x50   : > { %p1919_p0 = pneg %p1918_p12 }
  0x52   : > { %p1926_p8 = pnand %p1925_p4, %p1919_p0 }
  0x54   : > { %1929 = shalt.err (!%p1926_p8)
}
  0x55   : > { %1773 = dma.hbm_to_vmem [thread:$0]  (!%p2175_p11), %s2474_s2, 6144, %s278_s24, [#allocation6], %s2067_s25, %s2067_s25, %s2068_s26  }
  0x56   : > { %s2069_s30 = smov [#allocation10]   ;;  %s1930_s29 = scalar_lea.hbm %s2479_s7, 2048 }
  0x57   : > { %s312_s16 = sshll.u32 %s2069_s30, 4  ;;  %p1931_p4 = scmp.ne.s32.totalorder %s2479_s7, %s1930_s29  ;;  %s313_s16 = int_to_ptr.vmem [resolvable:$true] %s312_s16 }
  0x58   : > { %p1937_p10 = scmp.lt.u32.totalorder %s1930_s29, %s2479_s7 }
  0x59   : > { %p1933_p8 = pnand %p1931_p4, %p2191_p13 }
  0x5b   : > { %p1934_p6 = pneg %p1933_p8 }
  0x5d   : > { %p1939_p3 = pnand %p1937_p10, %p1934_p6 }
  0x5f   : > { %1942 = shalt.err (!%p1939_p3)
}
  0x60   : > { %s1943_s24 = scalar_lea.vmem %s313_s16, 2048  ;;  %p1951_p12 = scmp.lt.s32.totalorder %s313_s16, %s313_s16 }
  0x61   : > { %p1944_p5 = scmp.ne.s32.totalorder %s313_s16, %s1943_s24  ;;  %p1952_p0 = scmp.lt.s32.totalorder %s1943_s24, %s1943_s24 }
  0x63   : > { %p1946_p7 = pnand %p1944_p5, %p2191_p13  ;;  %p1953_p1 = por %p1952_p0, %p1951_p12 }
  0x65   : > { %p1947_p9 = pneg %p1946_p7 }
  0x67   : > { %p1954_p2 = pnand %p1953_p1, %p1947_p9 }
  0x69   : > { %1957 = shalt.err (!%p1954_p2)
}
  0x6a   : > { %1779 = dma.hbm_to_vmem [thread:$0]  (!%p2175_p11), %s2479_s7, 2048, %s313_s16, [#allocation9], %s2067_s25, %s2067_s25, %s2068_s26  }
  0x6b   : > { %s2285_s14 = sadd.s32 1, %s2062_s12   ;;  %s34_s20 = sadd.s32 1, %s2058_s11 }
  0x6c   : > { %s31_s30 = ssub.s32 %s2062_s12, %s2285_s14  ;;  %p41_p13 = scmp.ne.s32.totalorder %s2058_s11, %s2054_s10 }
  0x6d   : > { %p32_p4 = scmp.eq.s32.totalorder %s31_s30, 0  ;;  %p42_p8 = scmp.eq.s32.totalorder %s2062_s12, 0 }
  0x6e   : > { %p2496_p6 = scmp.eq.s32.totalorder %s2145_s13, 1  ;;  %p1792_p3 = scmp.lt.s32.totalorder %s2062_s12, 2 }
  0x6f   : > { %s2301_s28 = scalar_select %p32_p4, %s2058_s11, %s34_s20  }
  0x70   : > { %p2295_p10 = por %p2496_p6, %p41_p13  ;;  %p43_p5 = por %p42_p8, %p41_p13 }
  0x71   : > { %s329_s29 = sand.u32 1, %s2058_s11   ;;  %s1265_s16 = sshll.u32 %s2062_s12, 8 }
  0x72   : > { %s1242_s18 = sshll.u32 %s329_s29, 4  ;;  %s2308_s19 = scalar_lea.hbm %s2472_s0, %s1265_s16 }
  0x73   : > { %s333_s24 = scalar_lea.vmem [#allocation2], %s1242_s18  ;;  %p2312_p11 = pnand %p1792_p3, %p43_p5 }
  0x74   : > { %s340_s22 = sshll.u32 %s333_s24, 4  ;;  %s2316_s20 = scalar_lea.sflag [#allocation3], %s329_s29  ;;  %s2310_s22 = int_to_ptr.vmem [resolvable:$true] %s340_s22 }
  0x75   : > { %s1958_s30 = scalar_lea.hbm %s2308_s19, 256  ;;  %p1960_p9 = pneg %p2312_p11 }
  0x76   : > { %p1959_p7 = scmp.ne.s32.totalorder %s2308_s19, %s1958_s30  ;;  %s1963_s21 = scalar_lea.hbm %s2472_s0, 512 }
  0x77   : > { %p1964_p1 = scmp.lt.u32.totalorder %s2308_s19, %s2472_s0  ;;  %p1965_p2 = scmp.lt.u32.totalorder %s1963_s21, %s1958_s30 }
  0x78   : > { %p1961_p12 = pnand %p1960_p9, %p1959_p7  ;;  %p1967_p4 = scmp.lt.u32.totalorder %s1958_s30, %s2308_s19 }
  0x79   : > { %p1966_p13 = por %p1965_p2, %p1964_p1 }
  0x7a   : > { %p1962_p0 = pneg %p1961_p12 }
  0x7b   : > { %p1968_p8 = por %p1967_p4, %p1966_p13 }
  0x7d   : > { %p1969_p6 = pnand %p1968_p8, %p1962_p0 }
  0x7f   : > { %1972 = shalt.err (!%p1969_p6)
}
  0x80   : > { %s1973_s29 = scalar_lea.vmem %s2310_s22, 256  ;;  %s2070_s18 = smov [#allocation2]  }
  0x81   : > { %p1974_p3 = scmp.ne.s32.totalorder %s2310_s22, %s1973_s29  ;;  %s1978_s16 = sshll.u32 %s2070_s18, 4  ;;  %s1979_s16 = int_to_ptr.vmem [resolvable:$false] %s1978_s16 }
  0x82   : > { %s1980_s23 = scalar_lea.vmem %s1979_s16, 512  ;;  %p1981_p12 = scmp.lt.s32.totalorder %s2310_s22, %s1979_s16 }
  0x83   : > { %p1976_p5 = pnand %p1974_p3, %p1960_p9  ;;  %p1982_p1 = scmp.lt.s32.totalorder %s1980_s23, %s1973_s29 }
  0x85   : > { %p1977_p7 = pneg %p1976_p5  ;;  %p1983_p2 = por %p1982_p1, %p1981_p12 }
  0x87   : > { %p1984_p13 = pnand %p1983_p2, %p1977_p7 }
  0x89   : > { %1987 = shalt.err (!%p1984_p13)
}
  0x8a   : > { %1783 = dma.hbm_to_vmem [thread:$0]  (!%p2312_p11), %s2308_s19, 256, %s2310_s22, %s2316_s20, %s2067_s25, %s2067_s25, %s2068_s26  }
  0x8b   : > { %p2499_p9 = scmp.ne.s32.totalorder %s2493_s17, 0 }
  0x8c   : > { %s2350_s30 = sand.u32 (!%p2499_p9), 1, %s2054_s10   ;;  %p2500_p0 = scmp.ne.s32.totalorder (!%p2499_p9), %s2490_s15, 0 }
  0x8d   : > { %352 = sbr.rel (%p2499_p9) target bundleno = 1120 (0x460), region = 56  ;;  %s1246_s21 = sshll.u32 (!%p2499_p9), %s2350_s30, 4 }
  0x8e   : > { %s355_s24 = scalar_lea.sflag (!%p2499_p9), [#allocation3], %s2350_s30  ;;  %s2356_s9 = scalar_lea.vmem (!%p2499_p9), [#allocation2], %s1246_s21 }
  0x94   : > { %2033 = dma.done.wait (%p2500_p0), %s355_s24, 256  }
  0x95   : > { %2035 = vsyncadd (%p2500_p0), %s355_s24, 4294967040  ;;  %p2501_p11 = scmp.eq.s32.totalorder %s2145_s13, 0 }
  0x97   : > { %2037 = dma.done.wait (%p2501_p11), [#allocation6], 12288   ;;  %p2502_p4 = pmov %p2501_p11 }
  0x99   : > { %2039 = vsyncadd (%p2502_p4), [#allocation6], 4294955008  ;;  %p2503_p8 = pmov %p2502_p4 }
  0x9a   : > { %p2504_p6 = pmov %p2502_p4 }
  0x9b   : > { %2041 = dma.done.wait (%p2503_p8), [#allocation9], 4096  }
  0x9c   : > { %2043 = vsyncadd (%p2504_p6), [#allocation9], 4294963200  ;;  %v478_v0 = vld [vmem:[#allocation5 + $0x80] sm:$0xff]  ;;  %v479_v1 = vld [vmem:[#allocation5 + $0x88] sm:$0xff]  ;;  %vm453_vm0 = vcmask 1046528   ;;  %v409_v55 = vlaneseq  ;;  %vm444_vm1 = vcmask 1040384  }
  0x9d   : > { %v462_v2 = vld [vmem:[#allocation5] sm:$0xff]  ;;  %v1555_v3 = vpack.c.bf16 %v479_v1, %v478_v0  ;;  %v463_v4 = vld [vmem:[#allocation5 + $0x8] sm:$0xff]  ;;  %v480_v9 = vld [vmem:[#allocation5 + $0x90] sm:$0xff]  ;;  %s1266_s18 = sshll.u32 %s2145_s13, 8  ;;  %s408_s16 = scalar_lea.vmem [#allocation11], %s1246_s21 }
  0x9e   : > { %v494_v5 = vld [vmem:[#allocation5 + $0x100] sm:$0xff]  ;;  %v495_v6 = vld [vmem:[#allocation5 + $0x108] sm:$0xff]  ;;  %v1557_v7 = vpack.c.bf16 %v463_v4, %v462_v2  ;;  %v481_v10 = vld [vmem:[#allocation5 + $0x98] sm:$0xff]  ;;  %s1124_s23 = sshll.u32 %s408_s16, 4  ;;  %s2509_s15 = sld [smem:[#allocation18_spill]]  ;;  %s2428_s23 = int_to_ptr.vmem [resolvable:$true] %s1124_s23 }
  0x9f   : > { %v1587_v8 = vpack.c.bf16 %v495_v6, %v494_v5  ;;  %v464_v11 = vld [vmem:[#allocation5 + $0x10] sm:$0xff]  ;;  %1556 = vmatprep.subr.bf16.mxu0 %v1555_v3  ;;  %v1559_v12 = vpack.c.bf16 %v481_v10, %v480_v9  ;;  %v465_v13 = vld [vmem:[#allocation5 + $0x18] sm:$0xff]  ;;  %v482_v18 = vld [vmem:[#allocation5 + $0xa0] sm:$0xff]  ;;  %v410_v3 = vshrl.u32 %v409_v55, 7  ;;  %s1111_s13 = scalar_lea.sflag [#allocation4], %s2350_s30  ;;  %s1988_s21 = scalar_lea.vmem %s2428_s23, 256 }
  0xa0   : > { %v496_v14 = vld [vmem:[#allocation5 + $0x110] sm:$0xff]  ;;  %v497_v15 = vld [vmem:[#allocation5 + $0x118] sm:$0xff]  ;;  %1558 = vmatpush3.bf16.msra.mxu0 %v1557_v7  ;;  %v1561_v16 = vpack.c.bf16 %v465_v13, %v464_v11  ;;  %v483_v19 = vld [vmem:[#allocation5 + $0xa8] sm:$0xff]  ;;  %p1989_p3 = scmp.ne.s32.totalorder %s2428_s23, %s1988_s21  ;;  %s2071_s25 = smov [#allocation11]  }
  0xa1   : > { %1588 = vmatprep.subr.bf16.mxu1 %v1587_v8  ;;  %v1591_v17 = vpack.c.bf16 %v497_v15, %v496_v14  ;;  %v466_v20 = vld [vmem:[#allocation5 + $0x20] sm:$0xff]  ;;  %1560 = vmatprep.subr.bf16.mxu0 %v1559_v12  ;;  %v1563_v21 = vpack.c.bf16 %v483_v19, %v482_v18  ;;  %v467_v22 = vld [vmem:[#allocation5 + $0x28] sm:$0xff]  ;;  %v484_v26 = vld [vmem:[#allocation5 + $0xb0] sm:$0xff]  ;;  %v411_v13 = vadd.s32 8, %v410_v3  ;;  %s1992_s26 = sshll.u32 %s2071_s25, 4  ;;  %s1993_s26 = int_to_ptr.vmem [resolvable:$false] %s1992_s26 }
  0xa2   : > { %1590 = vmatpush3.bf16.msra.mxu1 %v1587_v8  ;;  %v498_v23 = vld [vmem:[#allocation5 + $0x120] sm:$0xff]  ;;  %v499_v24 = vld [vmem:[#allocation5 + $0x128] sm:$0xff]  ;;  %v485_v27 = vld [vmem:[#allocation5 + $0xb8] sm:$0xff]  ;;  %v1565_v30 = vpack.c.bf16 %v467_v22, %v466_v20  ;;  %v416_v20 = vand.u32 15, %v410_v3  ;;  %p1990_p5 = pnand %p1989_p3, %p2295_p10  ;;  %s1994_s19 = scalar_lea.vmem %s1993_s26, 512 }
  0xa3   : > { %1592 = vmatprep.subr.bf16.mxu1 %v1591_v17  ;;  %v1595_v25 = vpack.c.bf16 %v499_v24, %v498_v23  ;;  %v500_v28 = vld [vmem:[#allocation5 + $0x130] sm:$0xff]  ;;  %v501_v29 = vld [vmem:[#allocation5 + $0x138] sm:$0xff]  ;;  %v1567_v31 = vpack.c.bf16 %v485_v27, %v484_v26  ;;  %v486_v35 = vld [vmem:[#allocation5 + $0xc0] sm:$0xff]  ;;  %v423_v22 = vand.u32 15, %v411_v13  ;;  %p1995_p12 = scmp.lt.s32.totalorder %s2428_s23, %s1993_s26  ;;  %p1996_p1 = scmp.lt.s32.totalorder %s1994_s19, %s1988_s21 }
  0xa4   : > { %1562 = vmatpush3.bf16.msra.mxu0 %v1561_v16  ;;  %v468_v32 = vld [vmem:[#allocation5 + $0x30] sm:$0xff]  ;;  %v469_v33 = vld [vmem:[#allocation5 + $0x38] sm:$0xff]  ;;  %v1599_v34 = vpack.c.bf16 %v501_v29, %v500_v28  ;;  %v487_v36 = vld [vmem:[#allocation5 + $0xc8] sm:$0xff]  ;;  %vm2381_vm2 = vcmp.ne.s32.totalorder %v416_v20, 0  ;;  %s2426_s17 = scalar_lea.hbm %s2509_s15, %s1266_s18  ;;  %p1991_p7 = pneg %p1990_p5 }
  0xa5   : > { %1564 = vmatprep.subr.bf16.mxu0 %v1563_v21  ;;  %v502_v37 = vld [vmem:[#allocation5 + $0x140] sm:$0xff]  ;;  %v503_v38 = vld [vmem:[#allocation5 + $0x148] sm:$0xff]  ;;  %v1569_v39 = vpack.c.bf16 %v469_v33, %v468_v32  ;;  %v1571_v40 = vpack.c.bf16 %v487_v36, %v486_v35  ;;  %v488_v44 = vld [vmem:[#allocation5 + $0xd0] sm:$0xff]  ;;  %vm2387_vm3 = vcmp.ne.s32.totalorder %v423_v22, 15  ;;  %p1997_p2 = por %p1996_p1, %p1995_p12 }
  0xa6   : > { %1594 = vmatpush3.bf16.msra.mxu1 %v1591_v17  ;;  %v470_v41 = vld [vmem:[#allocation5 + $0x40] sm:$0xff]  ;;  %v471_v42 = vld [vmem:[#allocation5 + $0x48] sm:$0xff]  ;;  %v1603_v43 = vpack.c.bf16 %v503_v38, %v502_v37  ;;  %v489_v45 = vld [vmem:[#allocation5 + $0xd8] sm:$0xff] }
  0xa7   : > { %1596 = vmatprep.subr.bf16.mxu1 %v1595_v25  ;;  %v504_v46 = vld [vmem:[#allocation5 + $0x150] sm:$0xff]  ;;  %v505_v47 = vld [vmem:[#allocation5 + $0x158] sm:$0xff]  ;;  %v1573_v49 = vpack.c.bf16 %v471_v42, %v470_v41  ;;  %v1575_v52 = vpack.c.bf16 %v489_v45, %v488_v44  ;;  %v490_v58 = vld [vmem:[#allocation5 + $0xe0] sm:$0xff]  ;;  %p1998_p13 = pnand %p1997_p2, %p1991_p7 }
  0xa8   : > { %1566 = vmatpush3.bf16.msra.mxu0 %v1565_v30  ;;  %v2371_v48 = vld [vmem:[%s2356_s9] sm:$0xff]  ;;  %v2375_v50 = vld [vmem:[%s2356_s9 + $0x8] sm:$0xff]  ;;  %v1607_v57 = vpack.c.bf16 %v505_v47, %v504_v46 }
  0xa9   : > { %1568 = vmatprep.subr.bf16.mxu0 %v1567_v31  ;;  %581 = vmatprep.mubr.f32.mxu0 %v2371_v48  ;;  %v454_v51 = vrot.slane %v2371_v48, 1  ;;  %v472_v53 = vld [vmem:[#allocation5 + $0x50] sm:$0xff]  ;;  %v473_v54 = vld [vmem:[#allocation5 + $0x58] sm:$0xff]  ;;  %v455_v56 = vrot.slane %v2375_v50, 1  ;;  %v491_v59 = vld [vmem:[#allocation5 + $0xe8] sm:$0xff]  ;;  %v445_v21 = vrot.slane %v2371_v48, 7 }
  0xaa   : > { %1598 = vmatpush3.bf16.msra.mxu1 %v1595_v25  ;;  %v506_v60 = vld [vmem:[#allocation5 + $0x160] sm:$0xff]  ;;  %v507_v61 = vld [vmem:[#allocation5 + $0x168] sm:$0xff]  ;;  %v1577_v63 = vpack.c.bf16 %v473_v54, %v472_v53  ;;  %v1579_v0 = vpack.c.bf16 %v491_v59, %v490_v58  ;;  %v492_v5 = vld [vmem:[#allocation5 + $0xf0] sm:$0xff]  ;;  %v446_v33 = vrot.slane %v2375_v50, 7 }
  0xab   : > { %1600 = vmatprep.subr.bf16.mxu1 %v1599_v34  ;;  %v456_v62 = vsel %vm453_vm0, %v454_v51, %v455_v56  ;;  %v474_v1 = vld [vmem:[#allocation5 + $0x60] sm:$0xff]  ;;  %v475_v2 = vld [vmem:[#allocation5 + $0x68] sm:$0xff]  ;;  %v1611_v4 = vpack.c.bf16 %v507_v61, %v506_v60  ;;  %v493_v6 = vld [vmem:[#allocation5 + $0xf8] sm:$0xff]  ;;  %v450_v32 = vsel %vm444_vm1, 0.0, %v445_v21  ;;  %v459_v35 = vsel %vm453_vm0, %v455_v56, 0.0 }
  0xac   : > { %1570 = vmatpush3.bf16.msra.mxu0 %v1569_v39  ;;  %1447 = vmatprep.mubr.f32.mxu1 %v456_v62  ;;  %v508_v7 = vld [vmem:[#allocation5 + $0x170] sm:$0xff]  ;;  %v509_v8 = vld [vmem:[#allocation5 + $0x178] sm:$0xff]  ;;  %v1581_v9 = vpack.c.bf16 %v475_v2, %v474_v1  ;;  %v1583_v10 = vpack.c.bf16 %v493_v6, %v492_v5  ;;  %v703_v15 = vld [vmem:[#allocation7 + $0x80] sm:$0xff]  ;;  %v447_v45 = vsel %vm444_vm1, %v445_v21, %v446_v33 }
  0xad   : > { %1572 = vmatprep.subr.bf16.mxu0 %v1571_v40  ;;  %v476_v11 = vld [vmem:[#allocation5 + $0x70] sm:$0xff]  ;;  %v477_v12 = vld [vmem:[#allocation5 + $0x78] sm:$0xff]  ;;  %v1615_v14 = vpack.c.bf16 %v509_v8, %v508_v7  ;;  %v704_v16 = vld [vmem:[#allocation7 + $0x88] sm:$0xff] }
  0xae   : > { %1602 = vmatpush3.bf16.msra.mxu1 %v1599_v34  ;;  %v719_v17 = vld [vmem:[#allocation7 + $0x100] sm:$0xff]  ;;  %v720_v18 = vld [vmem:[#allocation7 + $0x108] sm:$0xff]  ;;  %v1585_v19 = vpack.c.bf16 %v477_v12, %v476_v11  ;;  %v1619_v23 = vpack.c.bf16 %v704_v16, %v703_v15  ;;  %v705_v26 = vld [vmem:[#allocation7 + $0x90] sm:$0xff] }
  0xaf   : > { %1604 = vmatprep.subr.bf16.mxu1 %v1603_v43  ;;  %v687_v24 = vld [vmem:[#allocation7] sm:$0xff]  ;;  %v688_v25 = vld [vmem:[#allocation7 + $0x8] sm:$0xff]  ;;  %v1651_v27 = vpack.c.bf16 %v720_v18, %v719_v17  ;;  %v706_v28 = vld [vmem:[#allocation7 + $0x98] sm:$0xff] }
  0xb0   : > { %1574 = vmatpush3.bf16.msra.mxu0 %v1573_v49  ;;  %v721_v29 = vld [vmem:[#allocation7 + $0x110] sm:$0xff]  ;;  %v722_v30 = vld [vmem:[#allocation7 + $0x118] sm:$0xff]  ;;  %v1621_v36 = vpack.c.bf16 %v688_v25, %v687_v24  ;;  %v1623_v37 = vpack.c.bf16 %v706_v28, %v705_v26  ;;  %v707_v40 = vld [vmem:[#allocation7 + $0xa0] sm:$0xff] }
  0xb1   : > { %1576 = vmatprep.subr.bf16.mxu0 %v1575_v52  ;;  %v689_v38 = vld [vmem:[#allocation7 + $0x10] sm:$0xff]  ;;  %v690_v39 = vld [vmem:[#allocation7 + $0x18] sm:$0xff]  ;;  %v1655_v41 = vpack.c.bf16 %v722_v30, %v721_v29  ;;  %v708_v42 = vld [vmem:[#allocation7 + $0xa8] sm:$0xff] }
  0xb2   : > { %1606 = vmatpush3.bf16.msra.mxu1 %v1603_v43  ;;  %v723_v43 = vld [vmem:[#allocation7 + $0x120] sm:$0xff]  ;;  %v724_v44 = vld [vmem:[#allocation7 + $0x128] sm:$0xff]  ;;  %v1625_v46 = vpack.c.bf16 %v690_v39, %v689_v38  ;;  %v1627_v47 = vpack.c.bf16 %v708_v42, %v707_v40  ;;  %v709_v52 = vld [vmem:[#allocation7 + $0xb0] sm:$0xff] }
  0xb3   : > { %1608 = vmatprep.subr.bf16.mxu1 %v1607_v57  ;;  %v691_v49 = vld [vmem:[#allocation7 + $0x20] sm:$0xff]  ;;  %v692_v51 = vld [vmem:[#allocation7 + $0x28] sm:$0xff]  ;;  %v1659_v53 = vpack.c.bf16 %v724_v44, %v723_v43  ;;  %v710_v54 = vld [vmem:[#allocation7 + $0xb8] sm:$0xff] }
  0xb4   : > { %1578 = vmatpush3.bf16.msra.mxu0 %v1577_v63  ;;  %v725_v55 = vld [vmem:[#allocation7 + $0x130] sm:$0xff]  ;;  %v726_v56 = vld [vmem:[#allocation7 + $0x138] sm:$0xff]  ;;  %v1631_v58 = vpack.c.bf16 %v710_v54, %v709_v52  ;;  %v711_v62 = vld [vmem:[#allocation7 + $0xc0] sm:$0xff] }
  0xb5   : > { %1580 = vmatprep.subr.bf16.mxu0 %v1579_v0  ;;  %v693_v59 = vld [vmem:[#allocation7 + $0x30] sm:$0xff]  ;;  %v694_v60 = vld [vmem:[#allocation7 + $0x38] sm:$0xff]  ;;  %v1663_v61 = vpack.c.bf16 %v726_v56, %v725_v55  ;;  %v712_v63 = vld [vmem:[#allocation7 + $0xc8] sm:$0xff] }
  0xb6   : > { %1610 = vmatpush3.bf16.msra.mxu1 %v1607_v57  ;;  %v1629_v57 = vpack.c.bf16 %v692_v51, %v691_v49  ;;  %v1633_v0 = vpack.c.bf16 %v694_v60, %v693_v59  ;;  %v1635_v1 = vpack.c.bf16 %v712_v63, %v711_v62  ;;  %v695_v2 = vld [vmem:[#allocation7 + $0x40] sm:$0xff]  ;;  %v696_v3 = vld [vmem:[#allocation7 + $0x48] sm:$0xff]  ;;  %v713_v5 = vld [vmem:[#allocation7 + $0xd0] sm:$0xff] }
  0xb7   : > { %1612 = vmatprep.subr.bf16.mxu1 %v1611_v4  ;;  %v714_v6 = vld [vmem:[#allocation7 + $0xd8] sm:$0xff]  ;;  %v697_v8 = vld [vmem:[#allocation7 + $0x50] sm:$0xff]  ;;  %v728_v12 = vld [vmem:[#allocation7 + $0x148] sm:$0xff] }
  0xb8   : > { %1582 = vmatpush3.bf16.msra.mxu0 %v1581_v9  ;;  %v1639_v7 = vpack.c.bf16 %v714_v6, %v713_v5  ;;  %v698_v9 = vld [vmem:[#allocation7 + $0x58] sm:$0xff]  ;;  %v716_v15 = vld [vmem:[#allocation7 + $0xe8] sm:$0xff]  ;;  %v699_v17 = vld [vmem:[#allocation7 + $0x60] sm:$0xff] }
  0xb9   : > { %1584 = vmatprep.subr.bf16.mxu0 %v1583_v10  ;;  %v727_v10 = vld [vmem:[#allocation7 + $0x140] sm:$0xff]  ;;  %v1641_v11 = vpack.c.bf16 %v698_v9, %v697_v8  ;;  %v700_v18 = vld [vmem:[#allocation7 + $0x68] sm:$0xff]  ;;  %v729_v20 = vld [vmem:[#allocation7 + $0x150] sm:$0xff] }
  0xba   : > { %1614 = vmatpush3.bf16.msra.mxu1 %v1611_v4  ;;  %v1637_v4 = vpack.c.bf16 %v696_v3, %v695_v2  ;;  %v1667_v13 = vpack.c.bf16 %v728_v12, %v727_v10  ;;  %v730_v21 = vld [vmem:[#allocation7 + $0x158] sm:$0xff]  ;;  %v701_v26 = vld [vmem:[#allocation7 + $0x70] sm:$0xff]  ;;  %v731_v28 = vld [vmem:[#allocation7 + $0x160] sm:$0xff] }
  0xbb   : > { %1616 = vmatprep.subr.bf16.mxu1 %v1615_v14  ;;  %v1671_v22 = vpack.c.bf16 %v730_v21, %v729_v20  ;;  %v718_v24 = vld [vmem:[#allocation7 + $0xf8] sm:$0xff]  ;;  %v732_v30 = vld [vmem:[#allocation7 + $0x168] sm:$0xff]  ;;  %v733_v33 = vld [vmem:[#allocation7 + $0x170] sm:$0xff] }
  0xbc   : > { %1586 = vmatpush3.bf16.msra.mxu0 %v1585_v19  ;;  %v1645_v19 = vpack.c.bf16 %v700_v18, %v699_v17  ;;  %v893_v38 = vld [vmem:[#allocation8 + $0x8] sm:$0xff]  ;;  %v1252_v43 = vld [vmem:[%s2475_s3] ss:$0 sm:$0xff]  ;;  %v894_v55 = vld [vmem:[#allocation8 + $0x10] sm:$0xff] }
  0xbd   : > { %1620 = vmatprep.subr.bf16.mxu0 %v1619_v23  ;;  %v717_v23 = vld [vmem:[#allocation7 + $0xf0] sm:$0xff]  ;;  %v895_v56 = vld [vmem:[#allocation8 + $0x18] sm:$0xff]  ;;  %v896_v62 = vld [vmem:[#allocation8 + $0x20] sm:$0xff] }
  0xbe   : > { %1618 = vmatpush3.bf16.msra.mxu1 %v1615_v14  ;;  %v715_v14 = vld [vmem:[#allocation7 + $0xe0] sm:$0xff]  ;;  %v1647_v25 = vpack.c.bf16 %v718_v24, %v717_v23  ;;  %v1687_v59 = vpack.c.bf16 %v895_v56, %v894_v55  ;;  %v897_v63 = vld [vmem:[#allocation8 + $0x28] sm:$0xff]  ;;  %v899_v8 = vld [vmem:[#allocation8 + $0x38] sm:$0xff] }
  0xbf   : > { %1652 = vmatprep.subr.bf16.mxu1 %v1651_v27  ;;  %1253 = vmatmul.mubr.msk.f32.vlgmr.msra.gmra.mrb[0].mxu0 %vm2381_vm2, %v450_v32  ;;  %v1643_v16 = vpack.c.bf16 %v716_v15, %v715_v14  ;;  %v1675_v32 = vpack.c.bf16 %v732_v30, %v731_v28  ;;  %v1691_v3 = vpack.c.bf16 %v897_v63, %v896_v62  ;;  %v900_v9 = vld [vmem:[#allocation8 + $0x40] sm:$0xff]  ;;  %v901_v10 = vld [vmem:[#allocation8 + $0x48] sm:$0xff]  ;;  %v902_v12 = vld [vmem:[#allocation8 + $0x50] sm:$0xff] }
  0xc0   : > { %586 = vmatprep.mubr.f32.mxu0 %v2375_v50  ;;  %1622 = vmatpush3.bf16.msra.mxu0 %v1621_v36  ;;  %v904_v15 = vld [vmem:[#allocation8 + $0x60] sm:$0xff]  ;;  %v906_v17 = vld [vmem:[#allocation8 + $0x70] sm:$0xff]  ;;  %v907_v18 = vld [vmem:[#allocation8 + $0x78] sm:$0xff] }
  0xc1   : > { %1448 = vmatmul.mubr.msk.f32.vlgmr.msra.gmra.mrb[0].mxu1 %vm2387_vm3, %v459_v35  ;;  %1624 = vmatprep.subr.bf16.mxu0 %v1623_v37  ;;  %v734_v35 = vld [vmem:[#allocation7 + $0x178] sm:$0xff]  ;;  %v892_v37 = vld [vmem:[#allocation8] sm:$0xff]  ;;  %v993_v21 = vld [vmem:[#allocation10 + $0x8] sm:$0xff] }
  0xc2   : > { %1654 = vmatpush3.bf16.msra.mxu1 %v1651_v27  ;;  %v702_v27 = vld [vmem:[#allocation7 + $0x78] sm:$0xff]  ;;  %v1679_v36 = vpack.c.bf16 %v734_v35, %v733_v33  ;;  %v1683_v39 = vpack.c.bf16 %v893_v38, %v892_v37  ;;  %v992_v20 = vld [vmem:[#allocation10] sm:$0xff]  ;;  %v1001_v35 = vld [vmem:[#allocation10 + $0x48] sm:$0xff] }
  0xc3   : > { %1656 = vmatprep.subr.bf16.mxu1 %v1655_v41  ;;  %587 = vmatmul.mubr.f32.gmra.mrb[2].mxu0 %v447_v45  ;;  %v1649_v29 = vpack.c.bf16 %v702_v27, %v701_v26  ;;  %v1715_v23 = vpack.c.bf16 %v993_v21, %v992_v20  ;;  %v995_v24 = vld [vmem:[#allocation10 + $0x18] sm:$0xff]  ;;  %v996_v26 = vld [vmem:[#allocation10 + $0x20] sm:$0xff]  ;;  %v997_v27 = vld [vmem:[#allocation10 + $0x28] sm:$0xff] }
  0xc4   : > { %1626 = vmatpush3.bf16.msra.mxu0 %v1625_v46  ;;  %v1723_v28 = vpack.c.bf16 %v997_v27, %v996_v26  ;;  %v999_v30 = vld [vmem:[#allocation10 + $0x38] sm:$0xff]  ;;  %v1000_v33 = vld [vmem:[#allocation10 + $0x40] sm:$0xff]  ;;  %v1002_v37 = vld [vmem:[#allocation10 + $0x50] sm:$0xff] }
  0xc5   : > { %1628 = vmatprep.subr.bf16.mxu0 %v1627_v47  ;;  %v1003_v38 = vld [vmem:[#allocation10 + $0x58] sm:$0xff] }
  0xc6   : > { %1658 = vmatpush3.bf16.msra.mxu1 %v1655_v41 }
  0xc7   : > { %1660 = vmatprep.subr.bf16.mxu1 %v1659_v53 }
  0xc8   : > { %1630 = vmatpush3.bf16.msra.mxu0 %v1629_v57 }
  0xc9   : > { %1632 = vmatprep.subr.bf16.mxu0 %v1631_v58 }
  0xca   : > { %1662 = vmatpush3.bf16.msra.mxu1 %v1659_v53 }
  0xcb   : > { %1664 = vmatprep.subr.bf16.mxu1 %v1663_v61 }
  0xcc   : > { %1634 = vmatpush3.bf16.msra.mxu0 %v1633_v0 }
  0xcd   : > { %1636 = vmatprep.subr.bf16.mxu0 %v1635_v1 }
  0xce   : > { %1666 = vmatpush3.bf16.msra.mxu1 %v1663_v61 }
  0xcf   : > { %1668 = vmatprep.subr.bf16.mxu1 %v1667_v13 }
  0xd0   : > { %1638 = vmatpush3.bf16.msra.mxu0 %v1637_v4 }
  0xd1   : > { %1640 = vmatprep.subr.bf16.mxu0 %v1639_v7  ;;  %v898_v7 = vld [vmem:[#allocation8 + $0x30] sm:$0xff] }
  0xd2   : > { %1670 = vmatpush3.bf16.msra.mxu1 %v1667_v13  ;;  %v1695_v31 = vpack.c.bf16 %v899_v8, %v898_v7  ;;  %v903_v13 = vld [vmem:[#allocation8 + $0x58] sm:$0xff] }
  0xd3   : > { %1672 = vmatprep.subr.bf16.mxu1 %v1671_v22  ;;  %v1703_v14 = vpack.c.bf16 %v903_v13, %v902_v12 }
  0xd4   : > { %1642 = vmatpush3.bf16.msra.mxu0 %v1641_v11  ;;  %v1699_v11 = vpack.c.bf16 %v901_v10, %v900_v9 }
  0xd5   : > { %1644 = vmatprep.subr.bf16.mxu0 %v1643_v16  ;;  %v905_v16 = vld [vmem:[#allocation8 + $0x68] sm:$0xff] }
  0xd6   : > { %1674 = vmatpush3.bf16.msra.mxu1 %v1671_v22  ;;  %v1707_v34 = vpack.c.bf16 %v905_v16, %v904_v15  ;;  %v994_v22 = vld [vmem:[#allocation10 + $0x10] sm:$0xff] }
  0xd7   : > { %1676 = vmatprep.subr.bf16.mxu1 %v1675_v32 }
  0xd8   : > { %1646 = vmatpush3.bf16.msra.mxu0 %v1645_v19  ;;  %v1711_v19 = vpack.c.bf16 %v907_v18, %v906_v17 }
  0xd9   : > { %1648 = vmatprep.subr.bf16.mxu0 %v1647_v25  ;;  %v1719_v25 = vpack.c.bf16 %v995_v24, %v994_v22 }
  0xda   : > { %1678 = vmatpush3.bf16.msra.mxu1 %v1675_v32 }
  0xdb   : > { %1680 = vmatprep.subr.bf16.mxu1 %v1679_v36 }
  0xdc   : > { %1650 = vmatpush3.bf16.msra.mxu0 %v1649_v29  ;;  %v998_v29 = vld [vmem:[#allocation10 + $0x30] sm:$0xff] }
  0xdd   : > { %1684 = vmatprep.subr.bf16.mxu0 %v1683_v39  ;;  %v1727_v32 = vpack.c.bf16 %v999_v30, %v998_v29 }
  0xde   : > { %1682 = vmatpush3.bf16.msra.mxu1 %v1679_v36  ;;  %v1731_v36 = vpack.c.bf16 %v1001_v35, %v1000_v33 }
  0xdf   : > { %1716 = vmatprep.subr.bf16.mxu1 %v1715_v23 }
 0x192   : > { %v1299_v40 = vpop.f32.mrb[0].mxu0 }
 0x193   : > { %v1300_v41 = vpop.f32.mrb[1].mxu0 }
 0x194   : > { %v1449_v42 = vpop.f32.mrb[0].mxu1  ;;  %v1301_v44 = vadd.f32 %v1300_v41, %v1299_v40  ;;  %v1004_v40 = vld [vmem:[#allocation10 + $0x60] sm:$0xff]  ;;  %v1005_v41 = vld [vmem:[#allocation10 + $0x68] sm:$0xff] }
 0x195   : > { %v658_v45 = vpop.f32.mrb[1].mxu1 }
 0x196   : > { %v1302_v46 = vpop.f32.mrb[2].mxu0  ;;  %v584_v47 = vadd.f32 %v1301_v44, %v1252_v43 }
 0x197   : > { %v1303_v49 = vpop.f32.mrb[3].mxu0 }
 0x198   : > { %v659_v51 = vadd.f32 %v658_v45, %v584_v47  ;;  %v1304_v52 = vadd.f32 %v1303_v49, %v1302_v46  ;;  %v1255_v45 = vld [vmem:[%s2476_s4] ss:$0 sm:$0xff] }
 0x19a   : > { %v667_v53 = vmax.f32 %v659_v51, 0.0  ;;  %v589_v54 = vadd.f32 %v1304_v52, %v1252_v43 }
 0x19c   : > { %v671_v57 = vrot.slane %v667_v53, 7  ;;  %806 = vmatprep.mubr.f32.mxu0 %v667_v53  ;;  %v664_v58 = vadd.f32 %v1449_v42, %v589_v54  ;;  %v679_v0 = vrot.slane %v667_v53, 1  ;;  %v1739_v42 = vpack.c.bf16 %v1005_v41, %v1004_v40 }
 0x19e   : > { %v676_v60 = vsel %vm444_vm1, 0.0, %v671_v57  ;;  %v668_v61 = vmax.f32 %v664_v58, 0.0  ;;  %v1006_v58 = vld [vmem:[#allocation10 + $0x70] sm:$0xff] }
 0x19f   : > { %1256 = vmatmul.mubr.msk.f32.vlgmr.msra.gmra.mrb[4].mxu0 %vm2381_vm2, %v676_v60 }
 0x1a0   : > { %811 = vmatprep.mubr.f32.mxu0 %v668_v61  ;;  %v672_v1 = vrot.slane %v668_v61, 7  ;;  %v680_v2 = vrot.slane %v668_v61, 1  ;;  %1686 = vmatpush3.bf16.msra.mxu0 %v1683_v39  ;;  %v1735_v39 = vpack.c.bf16 %v1003_v38, %v1002_v37  ;;  %v1258_v61 = vld [vmem:[%s2478_s6] ss:$0 sm:$0xff] }
 0x1a1   : > { %1688 = vmatprep.subr.bf16.mxu0 %v1687_v59 }
 0x1a2   : > { %v673_v4 = vsel %vm444_vm1, %v671_v57, %v672_v1  ;;  %v681_v5 = vsel %vm453_vm0, %v679_v0, %v680_v2  ;;  %v684_v6 = vsel %vm453_vm0, %v680_v2, 0.0 }
 0x1a3   : > { %812 = vmatmul.mubr.f32.gmra.mrb[6].mxu0 %v673_v4  ;;  %1482 = vmatprep.mubr.f32.mxu1 %v681_v5  ;;  %v1259_v4 = vld [vmem:[%s2480_s8] ss:$0 sm:$0xff] }
 0x1a4   : > { %1483 = vmatmul.mubr.msk.f32.vlgmr.msra.gmra.mrb[2].mxu1 %vm2387_vm3, %v684_v6  ;;  %1690 = vmatpush3.bf16.msra.mxu0 %v1687_v59  ;;  %v1007_v59 = vld [vmem:[#allocation10 + $0x78] sm:$0xff] }
 0x1a5   : > { %1692 = vmatprep.subr.bf16.mxu0 %v1691_v3  ;;  %1718 = vmatpush3.bf16.msra.mxu1 %v1715_v23  ;;  %v1743_v60 = vpack.c.bf16 %v1007_v59, %v1006_v58 }
 0x1a6   : > { %1720 = vmatprep.subr.bf16.mxu1 %v1719_v25 }
 0x1a8   : > { %1694 = vmatpush3.bf16.msra.mxu0 %v1691_v3 }
 0x1a9   : > { %1696 = vmatprep.subr.bf16.mxu0 %v1695_v31  ;;  %1722 = vmatpush3.bf16.msra.mxu1 %v1719_v25 }
 0x1aa   : > { %1724 = vmatprep.subr.bf16.mxu1 %v1723_v28 }
 0x1ac   : > { %1698 = vmatpush3.bf16.msra.mxu0 %v1695_v31 }
 0x1ad   : > { %1700 = vmatprep.subr.bf16.mxu0 %v1699_v11  ;;  %1726 = vmatpush3.bf16.msra.mxu1 %v1723_v28 }
 0x1ae   : > { %1728 = vmatprep.subr.bf16.mxu1 %v1727_v32 }
 0x1b0   : > { %1702 = vmatpush3.bf16.msra.mxu0 %v1699_v11 }
 0x1b1   : > { %1704 = vmatprep.subr.bf16.mxu0 %v1703_v14  ;;  %1730 = vmatpush3.bf16.msra.mxu1 %v1727_v32 }
 0x1b2   : > { %1732 = vmatprep.subr.bf16.mxu1 %v1731_v36 }
 0x1b4   : > { %1706 = vmatpush3.bf16.msra.mxu0 %v1703_v14 }
 0x1b5   : > { %1708 = vmatprep.subr.bf16.mxu0 %v1707_v34  ;;  %1734 = vmatpush3.bf16.msra.mxu1 %v1731_v36 }
 0x1b6   : > { %1736 = vmatprep.subr.bf16.mxu1 %v1735_v39 }
 0x1b8   : > { %1710 = vmatpush3.bf16.msra.mxu0 %v1707_v34 }
 0x1b9   : > { %1712 = vmatprep.subr.bf16.mxu0 %v1711_v19  ;;  %1738 = vmatpush3.bf16.msra.mxu1 %v1735_v39 }
 0x1ba   : > { %1740 = vmatprep.subr.bf16.mxu1 %v1739_v42 }
 0x1bc   : > { %1714 = vmatpush3.bf16.msra.mxu0 %v1711_v19 }
 0x1bd   : > { %1742 = vmatpush3.bf16.msra.mxu1 %v1739_v42 }
 0x1be   : > { %1744 = vmatprep.subr.bf16.mxu1 %v1743_v60 }
 0x1c1   : > { %1746 = vmatpush3.bf16.msra.mxu1 %v1743_v60 }
 0x272   : > { %v1355_v43 = vpop.f32.mrb[4].mxu0 }
 0x273   : > { %v1356_v44 = vpop.f32.mrb[5].mxu0 }
 0x274   : > { %v1357_v46 = vadd.f32 %v1356_v44, %v1355_v43 }
 0x276   : > { %v1358_v47 = vpop.f32.mrb[6].mxu0  ;;  %v809_v49 = vadd.f32 %v1357_v46, %v1255_v45 }
 0x277   : > { %v1359_v51 = vpop.f32.mrb[7].mxu0  ;;  %v1484_v52 = vpop.f32.mrb[2].mxu1 }
 0x278   : > { %v1360_v53 = vadd.f32 %v1359_v51, %v1358_v47  ;;  %v883_v54 = vpop.f32.mrb[3].mxu1 }
 0x279   : > { %v884_v55 = vadd.f32 %v883_v54, %v809_v49 }
 0x27a   : > { %v814_v56 = vadd.f32 %v1360_v53, %v1255_v45 }
 0x27b   : > { %1517 = vmatprep.mubr.f32.mxu0 %v884_v55 }
 0x27c   : > { %v889_v57 = vadd.f32 %v1484_v52, %v814_v56 }
 0x27e   : > { %1518 = vmatmul.mubr.f32.vlgmr.msra.gmra.mrb[8].mxu0 %v889_v57 }
 0x351   : > { %v1519_v62 = vpop.f32.mrb[8].mxu0 }
 0x352   : > { %v987_v63 = vadd.f32 %v1519_v62, %v1258_v61  ;;  %v981_v0 = vpop.f32.mrb[9].mxu0 }
 0x353   : > { %v982_v1 = vadd.f32 %v1258_v61, %v981_v0 }
 0x354   : > { %v991_v3 = vmax.f32 %v987_v63, 0.0 }
 0x355   : > { %v990_v2 = vmax.f32 %v982_v1, 0.0 }
 0x357   : > { %1552 = vmatprep.mubr.f32.mxu1 %v990_v2 }
 0x358   : > { %1553 = vmatmul.mubr.f32.vlgmr.msra.gmra.mrb[4].mxu1 %v991_v3 }
 0x42b   : > { %v1554_v5 = vpop.f32.mrb[4].mxu1 }
 0x42c   : > { %v1087_v6 = vadd.f32 %v1554_v5, %v1259_v4  ;;  %v1081_v7 = vpop.f32.mrb[5].mxu1 }
 0x42d   : > { %v1082_v8 = vadd.f32 %v1259_v4, %v1081_v7 }
 0x42e   : > { %v1091_v31 = vsub.f32 0.0, %v1087_v6 }
 0x42f   : > { %v1090_v9 = vsub.f32 0.0, %v1082_v8 }
 0x430   : > { %v1094_v10 = vmul.f32 1.442695, %v1091_v31 }
 0x431   : > { %v1092_v11 = vmul.f32 1.442695, %v1090_v9 }
 0x432   : > { %1838 = vpow2.f32 %v1094_v10 }
 0x433   : > { %1840 = vpow2.f32 %v1092_v11 }
 0x43c   : > { %v1839_v12 = vpop.eup %1838 }
 0x43d   : > { %v1841_v13 = vpop.eup %1840  ;;  %v1097_v14 = vadd.f32 1.0, %v1839_v12 }
 0x43e   : > { %v1096_v15 = vadd.f32 1.0, %v1841_v13 }
 0x43f   : > { %1842 = vrcp.f32 %v1097_v14 }
 0x440   : > { %1844 = vrcp.f32 %v1096_v15 }
 0x449   : > { %v1843_v16 = vpop.eup %1842 }
 0x44a   : > { %v1845_v34 = vpop.eup %1844  ;;  %v1103_v17 = vmul.f32 %v1843_v16, %v889_v57 }
 0x44b   : > { %v1102_v18 = vmul.f32 %v1845_v34, %v884_v55 }
 0x44c   : > { %v1105_v19 = vadd.f32 %v1103_v17, %v2375_v50 }
 0x44d   : > { %v1104_v20 = vadd.f32 %v1102_v18, %v2371_v48 }
 0x44e   : > { %v1107_v21 = vmax.f32 %v1105_v19, 0.0 }
 0x44f   : > { %v1106_v22 = vmax.f32 %v1104_v20, 0.0 }
 0x450   : > { %1109 = vst [vmem:[%s408_s16 + $0x8] sm:$0xff] %v1107_v21 }
 0x451   : > { %1108 = vst [vmem:[%s408_s16] sm:$0xff] %v1106_v22 }
 0x452   : > { %2001 = shalt.err (!%p1998_p13)
}
 0x453   : > { %s2002_s22 = scalar_lea.hbm %s2426_s17, 256  ;;  %s2006_s18 = scalar_lea.hbm %s2509_s15, 512 }
 0x454   : > { %p2003_p9 = scmp.ne.s32.totalorder %s2426_s17, %s2002_s22  ;;  %p2007_p4 = scmp.lt.u32.totalorder %s2426_s17, %s2509_s15 }
 0x455   : > { %p2008_p8 = scmp.lt.u32.totalorder %s2006_s18, %s2002_s22  ;;  %p2010_p3 = scmp.lt.u32.totalorder %s2002_s22, %s2426_s17 }
 0x456   : > { %p2004_p0 = pnand %p2003_p9, %p2295_p10 }
 0x457   : > { %p2009_p6 = por %p2008_p8, %p2007_p4 }
 0x458   : > { %p2005_p11 = pneg %p2004_p0 }
 0x459   : > { %p2011_p5 = por %p2010_p3, %p2009_p6 }
 0x45b   : > { %p2012_p7 = pnand %p2011_p5, %p2005_p11 }
 0x45d   : > { %2015 = shalt.err (!%p2012_p7)
}
 0x45e   : > { %s2072_s9 = smov 128   ;;  %s2073_s21 = smov 8  }
 0x45f   : > { %1765 = dma.vmem_to_hbm [thread:$0]  (%p2295_p10), %s2428_s23, 256, %s2426_s17, %s1111_s13, %s2072_s9, %s2072_s9, %s2073_s21  }
 0x460 PF: > { %s2510_s25 = sld [smem:[#allocation16_spill]]  ;;  %s2511_s26 = sld [smem:[#allocation17_spill]] }
 0x461   : > { %p2513_p1 = scmp.ge.s32.totalorder %s2062_s12, 2 }
 0x466   : > { %s1139_s19 = sand.u32 1, %s2510_s25   ;;  %p2512_p12 = scmp.ne.s32.totalorder %s2511_s26, 0 }
 0x467   : > { %s1140_s22 = scalar_lea.sflag [#allocation4], %s1139_s19 }
 0x468   : > { %p1785_p2 = pnand %p2513_p1, %p2512_p12 }
 0x46a   : > { %2045 = dma.done.wait (!%p1785_p2), %s1140_s22, 256  }
 0x46b   : > { %2047 = vsyncadd (!%p1785_p2), %s1140_s22, 4294967040  ;;  %p24_p13 = scmp.ge.s32.totalorder %s2285_s14, 4   ;;  %s2514_s30 = smov %s2054_s10 }
 0x46c   : > { %s2515_s10 = smov %s2058_s11  ;;  %s2516_s11 = smov %s2301_s28 }
 0x46d   : > { %s2517_s12 = smov %s2285_s14  ;;  %26 = sbr.rel (!%p24_p13) target bundleno = 9 (0x9), region = 117 }
 0x474   :  { %1145 = vsyncpa [#allocation3], 1 }
 0x475   :  { %1147 = vsyncpa [#allocation3 + $0x1], 1 }
 0x476   :  { %1148 = vsyncpa [#allocation6], 1 }
 0x477   :  { %1149 = vsyncpa [#allocation9], 1 }
 0x478   :  { %1150 = vsyncpa [#allocation4], 1 }
 0x479   :  { %1152 = vsyncpa [#allocation4 + $0x1], 1 }

</bundles_post_ra>
